<compile_context>
chip_gen: v6e
topology: v6e:2x2x1
jax: 0.10.0
libtpu: 0.0.40
codegen_flags: <defaults>
</compile_context>

<pallas_src>
import functools

import jax
import jax.numpy as jnp
from jax.experimental import pallas as pl
from jax.experimental.pallas import tpu as pltpu


def _round_up(x, m):
    return (x + m - 1) // m * m


# -----------------------------------------------------------------------------
# ROIAlign as a Pallas kernel (gather-free, matmul formulation)
# -----------------------------------------------------------------------------
def _interp_matrix(start, bin_size, n_src, sampling_ratio, out_size):
    """Separable ROIAlign interpolation matrix A [R, out_size, n_src]:
    (A @ f)[p] = mean over bin-p sub-samples of the clamped, validity-masked
    linear interpolation of the 1-D source f — the 1-D factor of bilinear
    ROIAlign."""
    sr = sampling_ratio
    p = jnp.arange(out_size, dtype=jnp.float32)
    s = jnp.arange(sr, dtype=jnp.float32)
    b = bin_size[:, None, None]
    # Same sample-coordinate expression as the reference / CUDA op.
    c = start[:, None, None] + p[None, :, None] * b + (s[None, None, :] + 0.5) * b / sr
    valid = (c >= -1.0) & (c <= float(n_src))
    cc = jnp.clip(c, 0.0, n_src - 1.0)
    c0 = jnp.floor(cc)
    frac = cc - c0
    c0i = c0.astype(jnp.int32)
    c1i = jnp.minimum(c0i + 1, n_src - 1)
    gi = jnp.arange(n_src, dtype=jnp.int32)
    w = ((1.0 - frac)[..., None] * (gi == c0i[..., None])
         + frac[..., None] * (gi == c1i[..., None]))            # [R, P, sr, n_src]
    w = jnp.where(valid[..., None], w, 0.0)
    return w.sum(axis=2) * (1.0 / sr)                            # [R, P, n_src]


def roi_align_interp(rois, *, out_size, spatial_scale, sampling_ratio,
                     height, width):
    """Per-ROI batch index + separable interpolation matrices (no gathers)."""
    # TODO(synk): sampling_ratio <= 0 (adaptive ceil(roi_h/pooled_h)) unsupported.
    batch_idx = rois[:, 0].astype(jnp.int32)
    x1 = rois[:, 1] * spatial_scale
    y1 = rois[:, 2] * spatial_scale
    x2 = rois[:, 3] * spatial_scale
    y2 = rois[:, 4] * spatial_scale
    roi_w = jnp.maximum(x2 - x1, 1.0)
    roi_h = jnp.maximum(y2 - y1, 1.0)
    ay = _interp_matrix(y1, roi_h / out_size, height, sampling_ratio, out_size)
    ax = _interp_matrix(x1, roi_w / out_size, width, sampling_ratio, out_size)
    return batch_idx, ay, ax


def _roi_align_kernel(bidx_ref, ay_ref, ax_ref, feat_ref, out_ref):
    del bidx_ref                      # only consumed by the feature index_map
    ay = ay_ref[0]                    # [P, Hf] f32
    ax = ax_ref[0]                    # [P, Wf] f32
    feat = feat_ref[0]                # [C, Hf, Wf] f32
    c = feat.shape[0]
    ay_b = jnp.broadcast_to(ay[None], (c,) + ay.shape)
    ax_b = jnp.broadcast_to(ax[None], (c,) + ax.shape)
    # pooled[c, p, q] = Ay[p, :] @ feat[c] @ Ax[q, :].T  — two batched MXU
    # matmuls replacing the data-dependent bilinear gather.
    t = jnp.einsum('cph,chw->cpw', ay_b, feat,
                   preferred_element_type=jnp.float32)
    pooled = jnp.einsum('cpw,cqw->cpq', t, ax_b,
                        preferred_element_type=jnp.float32)
    out_ref[0] = pooled.astype(out_ref.dtype)


def roi_align_pallas(features, batch_idx, ay, ax, *, out_dtype=jnp.bfloat16):
    """features [N,C,Hf,Wf] f32; batch_idx [R] i32; ay [R,P,Hf]; ax [R,P,Wf].
    Returns pooled [R, C, P, P] in out_dtype.  One grid step per ROI; the ROI's
    image is selected via the scalar-prefetched batch index (the pipeline skips
    the re-DMA when consecutive ROIs share an image, the usual per-image
    grouping of proposals)."""
    n, c, hf, wf = features.shape
    r, p, _ = ay.shape
    # TODO(synk): for large FPN levels DMA only the ROI crop (manual
    # make_async_copy / pl.Element offsets) instead of the whole image block.
    vmem_limit = min(max(
        2 * (c * hf * wf * 4 + p * (hf + wf) * 4 + c * p * p * 2) + (4 << 20),
        16 << 20), 100 << 20)
    grid_spec = pltpu.PrefetchScalarGridSpec(
        num_scalar_prefetch=1,
        grid=(r,),
        in_specs=[
            pl.BlockSpec((1, p, hf), lambda i, bidx: (i, 0, 0)),
            pl.BlockSpec((1, p, wf), lambda i, bidx: (i, 0, 0)),
            pl.BlockSpec((1, c, hf, wf), lambda i, bidx: (bidx[i], 0, 0, 0)),
        ],
        out_specs=pl.BlockSpec((1, c, p, p), lambda i, bidx: (i, 0, 0, 0)),
    )
    return pl.pallas_call(
        _roi_align_kernel,
        out_shape=jax.ShapeDtypeStruct((r, c, p, p), out_dtype),
        grid_spec=grid_spec,
        compiler_params=pltpu.CompilerParams(
            # "arbitrary": keep ROI order sequential so same-image feature
            # blocks stay resident; per-ROI work is tiny.
            dimension_semantics=("arbitrary",),
            vmem_limit_bytes=int(vmem_limit),
        ),
    )(batch_idx, ay, ax, features)


# -----------------------------------------------------------------------------
# fc6/fc7 + fused cls/bbox predictor kernels
# -----------------------------------------------------------------------------
def _mlp_resident_kernel(x_ref, w6_ref, b6_ref, w7_ref, b7_ref, wh_ref, bh_ref,
                         feat_ref, head_ref):
    # fc6 + ReLU (bf16 operands, f32 accumulate); w6 is VMEM-resident, read
    # from HBM exactly once for the whole call.
    h6 = jnp.dot(x_ref[...], w6_ref[...], preferred_element_type=jnp.float32)
    h6 = jnp.maximum(h6 + b6_ref[...], 0.0)
    # fc7 + ReLU.
    h7 = jnp.dot(h6.astype(w7_ref.dtype), w7_ref[...],
                 preferred_element_type=jnp.float32)
    h7 = jnp.maximum(h7 + b7_ref[...], 0.0)
    feat_ref[...] = h7.astype(feat_ref.dtype)
    # Fused cls_score + bbox_pred: one lane-dense (128-padded) matmul.
    head = jnp.dot(h7.astype(wh_ref.dtype), wh_ref[...],
                   preferred_element_type=jnp.float32) + bh_ref[...]
    head_ref[...] = head.astype(head_ref.dtype)


def _mlp_ktiled_kernel(x_ref, w6_ref, b6_ref, w7_ref, b7_ref, wh_ref, bh_ref,
                       feat_ref, head_ref, acc_ref):
    k = pl.program_id(1)

    @pl.when(k == 0)
    def _init():
        acc_ref[...] = jnp.zeros_like(acc_ref)

    # fc6 partial product for this (R-tile, K-tile).
    acc_ref[...] += jnp.dot(x_ref[...], w6_ref[...],
                            preferred_element_type=jnp.float32)

    @pl.when(k == pl.num_programs(1) - 1)
    def _epilogue():
        h6 = jnp.maximum(acc_ref[...] + b6_ref[...], 0.0)
        h7 = jnp.dot(h6.astype(w7_ref.dtype), w7_ref[...],
                     preferred_element_type=jnp.float32)
        h7 = jnp.maximum(h7 + b7_ref[...], 0.0)
        feat_ref[...] = h7.astype(feat_ref.dtype)
        head = jnp.dot(h7.astype(wh_ref.dtype), wh_ref[...],
                       preferred_element_type=jnp.float32) + bh_ref[...]
        head_ref[...] = head.astype(head_ref.dtype)


def _const_spec(shape, single_buffer):
    """Constant-index (VMEM-resident) BlockSpec; single pipeline buffer when
    supported (halves resident VMEM — matters most on v7x's 64 MiB/TC)."""
    zeros = (0,) * len(shape)
    if single_buffer:
        return pl.BlockSpec(shape, lambda *_: zeros, pipeline_mode=pl.Buffered(1))
    return pl.BlockSpec(shape, lambda *_: zeros)


def _mlp_call(x_flat, params, *, tr, resident, tk, single_buffer_residents):
    r_pad, d_in = x_flat.shape
    h = params["w7"].shape[0]
    d_head = params["w_head"].shape[1]
    n_r = r_pad // tr
    sb = single_buffer_residents

    if resident:
        grid = (n_r,)
        in_specs = [
            pl.BlockSpec((tr, d_in), lambda i: (i, 0)),        # x (streamed)
            _const_spec((d_in, h), sb),                        # w6 (resident)
            _const_spec((1, h), sb),                           # b6
            _const_spec((h, h), sb),                           # w7
            _const_spec((1, h), sb),                           # b7
            _const_spec((h, d_head), sb),                      # fused head W
            _const_spec((1, d_head), sb),                      # fused head b
        ]
        out_specs = [
            pl.BlockSpec((tr, h), lambda i: (i, 0)),
            pl.BlockSpec((tr, d_head), lambda i: (i, 0)),
        ]
        scratch = []
        kernel = _mlp_resident_kernel
        dim_sem = ("parallel",)
        w6_streams, acc_bytes = 1, 0
        x_tile, w6_tile = tr * d_in * 2, 0
    else:
        if d_in % tk != 0:
            raise ValueError(f"tk={tk} must divide Din={d_in}")
        n_k = d_in // tk
        grid = (n_r, n_k)
        in_specs = [
            pl.BlockSpec((tr, tk), lambda i, k: (i, k)),       # x tile (streamed)
            pl.BlockSpec((tk, h), lambda i, k: (k, 0)),        # w6 tile (streamed)
            _const_spec((1, h), sb),
            _const_spec((h, h), sb),
            _const_spec((1, h), sb),
            _const_spec((h, d_head), sb),
            _const_spec((1, d_head), sb),
        ]
        out_specs = [
            pl.BlockSpec((tr, h), lambda i, k: (i, 0)),
            pl.BlockSpec((tr, d_head), lambda i, k: (i, 0)),
        ]
        scratch = [pltpu.VMEM((tr, h), jnp.float32)]           # fc6 accumulator
        kernel = _mlp_ktiled_kernel
        dim_sem = ("parallel", "arbitrary")
        w6_streams, acc_bytes = n_r, tr * h * 4
        x_tile, w6_tile = tr * tk * 2, tk * h * 2

    buf = 1 if sb else 2
    resident_bytes = buf * ((d_in * h * 2 if resident else 0)
                            + h * h * 2 + h * d_head * 2 + (2 * h + d_head) * 4)
    stream_bytes = 2 * (x_tile + w6_tile + tr * h * 2 + tr * d_head * 4)
    vmem_limit = min(max(int(1.25 * (resident_bytes + stream_bytes + acc_bytes))
                         + (4 << 20), 32 << 20), 100 << 20)

    flops = 2 * r_pad * (d_in * h + h * h + h * d_head)
    bytes_accessed = (x_flat.size * x_flat.dtype.itemsize
                      + d_in * h * 2 * w6_streams
                      + (h * h + h * d_head) * 2 + (2 * h + d_head) * 4
                      + r_pad * h * 2 + r_pad * d_head * 4)

    return pl.pallas_call(
        kernel,
        out_shape=(
            jax.ShapeDtypeStruct((r_pad, h), jnp.bfloat16),      # features (bf16)
            jax.ShapeDtypeStruct((r_pad, d_head), jnp.float32),  # fused logits
        ),
        grid_spec=pltpu.PrefetchScalarGridSpec(
            num_scalar_prefetch=0, grid=grid, in_specs=in_specs,
            out_specs=out_specs, scratch_shapes=scratch),
        compiler_params=pltpu.CompilerParams(
            dimension_semantics=dim_sem, vmem_limit_bytes=int(vmem_limit)),
        cost_estimate=pl.CostEstimate(flops=int(flops), transcendentals=0,
                                      bytes_accessed=int(bytes_accessed)),
    )(x_flat, params["w6"], params["b6"], params["w7"], params["b7"],
      params["w_head"], params["b_head"])


def _pick_tk(d_in, cap=2048):
    """Largest multiple-of-128 divisor of d_in up to `cap` (12544 -> 1792)."""
    best = 0
    for cand in range(128, min(d_in, cap) + 1, 128):
        if d_in % cand == 0:
            best = cand
    return best if best else min(d_in, cap)


def box_head_mlp(x_flat, params, *, tr=128, w6_resident=None, tk=None):
    """x_flat: [r_pad, Din] bf16, rows already padded to a multiple of tr.
    Returns (features [r_pad, H] bf16, fused head logits [r_pad, d_head] f32)."""
    r_pad, d_in = x_flat.shape
    if r_pad % tr:
        raise ValueError(f"rows ({r_pad}) must be a multiple of tr ({tr})")
    if w6_resident is None:
        # Keep w6 VMEM-resident when it fits comfortably (lower this budget on
        # v7x: 64 MiB/TC and each TC holds its own copy under megacore).
        w6_resident = params["w6"].size * params["w6"].dtype.itemsize <= (32 << 20)
    if not w6_resident and tk is None:
        tk = _pick_tk(d_in)
    try:
        return _mlp_call(x_flat, params, tr=tr, resident=w6_resident, tk=tk,
                         single_buffer_residents=True)
    except Exception:
        # TODO(synk): pl.Buffered(1) single-buffering unsupported on this jax
        # build; fall back to default double-buffered resident weights.
        return _mlp_call(x_flat, params, tr=tr, resident=w6_resident, tk=tk,
                         single_buffer_residents=False)


# -----------------------------------------------------------------------------
# ROIBoxHead forward (inference path)
# -----------------------------------------------------------------------------
def roi_box_head_forward(features, rois, params, *, resolution, spatial_scale,
                         sampling_ratio, num_classes, tr=128,
                         w6_resident=None, tk=None):
    """features: [N, C, H, W] (single FPN level); rois: [R, 5]
    (batch_idx, x1, y1, x2, y2).  Mirrors the eval-mode PyTorch forward:
    returns (x, (class_logits, box_regression), {})."""
    n, c, hf, wf = features.shape
    r = rois.shape[0]
    r_pad = _round_up(max(r, tr), tr)

    bidx, ay, ax = roi_align_interp(
        rois, out_size=resolution, spatial_scale=spatial_scale,
        sampling_ratio=sampling_ratio, height=hf, width=wf)
    # Pad only the tiny per-ROI metadata (zero matrices -> zero pooled rows).
    bidx = jnp.pad(bidx, (0, r_pad - r))
    ay = jnp.pad(ay, ((0, r_pad - r), (0, 0), (0, 0)))
    ax = jnp.pad(ax, ((0, r_pad - r), (0, 0), (0, 0)))

    pooled = roi_align_pallas(features, bidx, ay, ax)           # [r_pad,C,P,P] bf16
    x_flat = pooled.reshape(r_pad, -1)                          # torch .view(R,-1)

    feat_p, head_p = box_head_mlp(x_flat, params, tr=tr,
                                  w6_resident=w6_resident, tk=tk)
    n_cls = num_classes
    class_logits = head_p[:r, :n_cls]
    box_regression = head_p[:r, n_cls:n_cls + 4 * n_cls]
    # TODO(synk): post_processor (box decode + NMS) and loss_evaluator (proposal
    # subsampling, CE / smooth-L1) have no clean Pallas equivalent; returning
    # raw logits instead of BoxLists and an empty loss dict (eval path).
    return feat_p[:r], (class_logits, box_regression), {}


# -----------------------------------------------------------------------------
# Plain-JAX gather-based ROIAlign — reference for the self-check only
# -----------------------------------------------------------------------------
def _bilinear_sample_ref(feat, y, x):
    C, H, W = feat.shape
    valid = (y >= -1.0) & (y <= H) & (x >= -1.0) & (x <= W)
    y = jnp.clip(y, 0.0, H - 1.0)
    x = jnp.clip(x, 0.0, W - 1.0)
    y0 = jnp.floor(y).astype(jnp.int32)
    x0 = jnp.floor(x).astype(jnp.int32)
    y1 = jnp.minimum(y0 + 1, H - 1)
    x1 = jnp.minimum(x0 + 1, W - 1)
    ly = y - y0.astype(y.dtype)
    lx = x - x0.astype(x.dtype)
    hy = 1.0 - ly
    hx = 1.0 - lx
    v00 = feat[:, y0, x0]
    v01 = feat[:, y0, x1]
    v10 = feat[:, y1, x0]
    v11 = feat[:, y1, x1]
    out = hy * hx * v00 + hy * lx * v01 + ly * hx * v10 + ly * lx * v11
    return jnp.where(valid[None], out, 0.0)


def _roi_align_one_ref(features, roi, out_size, spatial_scale, sampling_ratio):
    b_idx = roi[0].astype(jnp.int32)
    feat = jax.lax.dynamic_index_in_dim(features, b_idx, axis=0, keepdims=False)
    x1, y1, x2, y2 = roi[1:] * spatial_scale
    roi_w = jnp.maximum(x2 - x1, 1.0)
    roi_h = jnp.maximum(y2 - y1, 1.0)
    bin_w = roi_w / out_size
    bin_h = roi_h / out_size
    sr = sampling_ratio
    p = jnp.arange(out_size, dtype=jnp.float32)
    s = jnp.arange(sr, dtype=jnp.float32)
    ys = (y1 + p[:, None] * bin_h + (s[None, :] + 0.5) * bin_h / sr).reshape(-1)
    xs = (x1 + p[:, None] * bin_w + (s[None, :] + 0.5) * bin_w / sr).reshape(-1)
    S = out_size * sr
    yy = jnp.broadcast_to(ys[:, None], (S, S))
    xx = jnp.broadcast_to(xs[None, :], (S, S))
    vals = _bilinear_sample_ref(feat, yy, xx)
    vals = vals.reshape(feat.shape[0], out_size, sr, out_size, sr)
    return vals.mean(axis=(2, 4))


def roi_align_ref(features, rois, out_size, spatial_scale, sampling_ratio):
    fn = functools.partial(_roi_align_one_ref, out_size=out_size,
                           spatial_scale=spatial_scale,
                           sampling_ratio=sampling_ratio)
    return jax.vmap(fn, in_axes=(None, 0))(features, rois)


# -----------------------------------------------------------------------------
# Deterministic parameter init. Weights stored transposed [in, out], pre-cast
# to bf16; cls/bbox heads fused and pre-padded to a 128-lane multiple ONCE here
# so the per-forward wrapper never casts or pads weights.
# -----------------------------------------------------------------------------
def init_params(key, in_channels, resolution, representation_size, num_classes):
    d_in = in_channels * resolution * resolution
    h = representation_size
    n_cls = num_classes
    n_box = 4 * num_classes
    d_head = _round_up(n_cls + n_box, 128)
    ks = jax.random.split(key, 7)
    scale = 0.01
    w6 = scale * jax.random.normal(ks[0], (d_in, h), jnp.float32)
    w7 = scale * jax.random.normal(ks[1], (h, h), jnp.float32)
    wc = scale * jax.random.normal(ks[2], (h, n_cls), jnp.float32)
    wb = scale * jax.random.normal(ks[3], (h, n_box), jnp.float32)
    w_head = (jnp.zeros((h, d_head), jnp.float32)
              .at[:, :n_cls].set(wc)
              .at[:, n_cls:n_cls + n_box].set(wb))
    bc = scale * jax.random.normal(ks[4], (n_cls,), jnp.float32)
    bb = scale * jax.random.normal(ks[5], (n_box,), jnp.float32)
    b_head = (jnp.zeros((1, d_head), jnp.float32)
              .at[0, :n_cls].set(bc)
              .at[0, n_cls:n_cls + n_box].set(bb))
    return {
        "w6": w6.astype(jnp.bfloat16),
        "b6": scale * jax.random.normal(ks[6], (1, h), jnp.float32),
        "w7": w7.astype(jnp.bfloat16),
        "b7": jnp.zeros((1, h), jnp.float32),
        "w_head": w_head.astype(jnp.bfloat16),
        "b_head": b_head,
    }


if __name__ == "__main__":
    key = jax.random.PRNGKey(0)
    k_feat, k_box, k_param = jax.random.split(key, 3)

    # Small demo shapes: 2 images, 8 channels, 16x16 feature map, pooler
    # resolution 8 (Din = 8*8*8 = 512), 200 ROIs (-> two row tiles of tr=128),
    # hidden = 128, num_classes = 8 (fused head padded to 128 lanes).
    N, C, Hf, Wf = 2, 8, 16, 16
    resolution = 8
    spatial_scale = 0.5            # feature stride 2 for a 32x32 image
    sampling_ratio = 2
    representation_size = 128
    num_classes = 8
    R = 200
    tr = 128

    features = jax.random.normal(k_feat, (N, C, Hf, Wf), dtype=jnp.float32)

    # Valid proposal boxes (batch_idx, x1, y1, x2, y2), grouped per image.
    kb1, kb2 = jax.random.split(k_box)
    xy1 = jax.random.uniform(kb1, (R, 2), minval=0.0, maxval=12.0)
    wh = jax.random.uniform(kb2, (R, 2), minval=4.0, maxval=18.0)
    xy2 = jnp.minimum(xy1 + wh, 31.0)
    img_of_roi = (jnp.arange(R) * N // R).astype(jnp.float32)[:, None]
    rois = jnp.concatenate([img_of_roi, xy1, xy2], axis=1)        # [R, 5]

    params = init_params(k_param, C, resolution, representation_size, num_classes)

    # Run the forward twice: VMEM-resident-w6 MLP (default, recommended on
    # v5e/v6e) and the K-tiled fallback (used when w6 does not fit VMEM).
    out_res = roi_box_head_forward(
        features, rois, params, resolution=resolution,
        spatial_scale=spatial_scale, sampling_ratio=sampling_ratio,
        num_classes=num_classes, tr=tr, w6_resident=True)
    out_kt = roi_box_head_forward(
        features, rois, params, resolution=resolution,
        spatial_scale=spatial_scale, sampling_ratio=sampling_ratio,
        num_classes=num_classes, tr=tr, w6_resident=False, tk=256)
    jax.block_until_ready((out_res, out_kt))

    # ---- self-checks --------------------------------------------------------
    # 1) Pallas ROIAlign vs the gather-based reference (bf16 output rounding).
    pooled_ref = roi_align_ref(features, rois, resolution, spatial_scale,
                               sampling_ratio)                    # [R,C,P,P] f32
    r_pad = _round_up(R, tr)
    bidx, ay, ax = roi_align_interp(
        rois, out_size=resolution, spatial_scale=spatial_scale,
        sampling_ratio=sampling_ratio, height=Hf, width=Wf)
    bidx_p = jnp.pad(bidx, (0, r_pad - R))
    ay_p = jnp.pad(ay, ((0, r_pad - R), (0, 0), (0, 0)))
    ax_p = jnp.pad(ax, ((0, r_pad - R), (0, 0), (0, 0)))
    pooled_pal = roi_align_pallas(features, bidx_p, ay_p, ax_p)[:R]
    assert jnp.allclose(pooled_pal.astype(jnp.float32), pooled_ref,
                        atol=2e-2, rtol=2e-2)

    # 2) MLP kernels vs a plain-JAX reference fed the same bf16 pooled input.
    xb = pooled_pal.reshape(R, -1)                                # bf16
    h_r = jnp.maximum(jnp.dot(xb, params["w6"],
                              preferred_element_type=jnp.float32)
                      + params["b6"], 0.0)
    h_r = jnp.maximum(jnp.dot(h_r.astype(jnp.bfloat16), params["w7"],
                              preferred_element_type=jnp.float32)
                      + params["b7"], 0.0)
    head_r = (jnp.dot(h_r.astype(jnp.bfloat16), params["w_head"],
                      preferred_element_type=jnp.float32) + params["b_head"])
    cls_r = head_r[:, :num_classes]
    box_r = head_r[:, num_classes:5 * num_classes]

    for feat, (cls, box), losses in (out_res, out_kt):
        assert feat.shape == (R, representation_size)
        assert cls.shape == (R, num_classes)
        assert box.shape == (R, 4 * num_classes)
        assert losses == {}
        assert jnp.allclose(feat.astype(jnp.float32), h_r, atol=2e-3, rtol=2e-2)
        assert jnp.allclose(cls, cls_r, atol=2e-3, rtol=2e-2)
        assert jnp.allclose(box, box_r, atol=2e-3, rtol=2e-2)

    print("KERNEL_OK")
</pallas_src>

<mosaic_0001>
module attributes {stable_mosaic.version = 11 : i64} {
  func.func @_roi_align_kernel(%arg0: i32, %arg1: memref<256xi32, #tpu.memory_space<smem>>, %arg2: memref<1x8x16xf32, #tpu.memory_space<vmem>>, %arg3: memref<1x8x16xf32, #tpu.memory_space<vmem>>, %arg4: memref<1x8x16x16xf32, #tpu.memory_space<vmem>>, %arg5: memref<1x8x8x8xbf16, #tpu.memory_space<vmem>>) attributes {dimension_semantics = [#tpu.dimension_semantics<arbitrary>], iteration_bounds = array<i64: 256>, scalar_prefetch = 1 : i64, scratch_operands = 0 : i64, tpu.core_type = #tpu.core_type<tc>, window_params = [{transform_indices = @transform_0, window_bounds = array<i64: 1, 8, 16>}, {transform_indices = @transform_1, window_bounds = array<i64: 1, 8, 16>}, {transform_indices = @transform_2, window_bounds = array<i64: 1, 8, 16, 16>}, {transform_indices = @transform_3, window_bounds = array<i64: 1, 8, 8, 8>}]} {
    %c0 = arith.constant 0 : index
    %c0_0 = arith.constant 0 : index
    %c0_1 = arith.constant 0 : index
    %0 = vector.load %arg2[%c0, %c0_0, %c0_1] : memref<1x8x16xf32, #tpu.memory_space<vmem>>, vector<1x8x16xf32>
    %1 = vector.shape_cast %0 : vector<1x8x16xf32> to vector<8x16xf32>
    %c0_2 = arith.constant 0 : index
    %c0_3 = arith.constant 0 : index
    %c0_4 = arith.constant 0 : index
    %2 = vector.load %arg3[%c0_2, %c0_3, %c0_4] : memref<1x8x16xf32, #tpu.memory_space<vmem>>, vector<1x8x16xf32>
    %3 = vector.shape_cast %2 : vector<1x8x16xf32> to vector<8x16xf32>
    %c0_5 = arith.constant 0 : index
    %c0_6 = arith.constant 0 : index
    %c0_7 = arith.constant 0 : index
    %c0_8 = arith.constant 0 : index
    %4 = vector.load %arg4[%c0_5, %c0_6, %c0_7, %c0_8] : memref<1x8x16x16xf32, #tpu.memory_space<vmem>>, vector<1x8x16x16xf32>
    %5 = vector.shape_cast %4 : vector<1x8x16x16xf32> to vector<8x16x16xf32>
    %6 = vector.shape_cast %1 : vector<8x16xf32> to vector<1x8x16xf32>
    %7 = vector.shape_cast %6 : vector<1x8x16xf32> to vector<1x8x16xf32>
    %8 = vector.broadcast %7 : vector<1x8x16xf32> to vector<8x8x16xf32>
    %9 = vector.shape_cast %3 : vector<8x16xf32> to vector<1x8x16xf32>
    %10 = vector.shape_cast %9 : vector<1x8x16xf32> to vector<1x8x16xf32>
    %11 = vector.broadcast %10 : vector<1x8x16xf32> to vector<8x8x16xf32>
    "tpu.trace_start"() <{level = 10 : i32, message = "cph,chw->cpw"}> : () -> ()
    %cst = arith.constant dense<0.000000e+00> : vector<8x8x16xf32>
    %12 = tpu.matmul %8, %5, %cst {dimension_numbers = #tpu.dot_dimension_numbers<[2], [1], [1], [2], [0, 0, 0, 1, 1, 2], [0], [0]>} : vector<8x8x16xf32>, vector<8x16x16xf32>, vector<8x8x16xf32> -> vector<8x8x16xf32>
    "tpu.trace_stop"() : () -> ()
    "tpu.trace_start"() <{level = 10 : i32, message = "cpw,cqw->cpq"}> : () -> ()
    %cst_9 = arith.constant dense<0.000000e+00> : vector<8x8x8xf32>
    %13 = tpu.matmul %12, %11, %cst_9 {dimension_numbers = #tpu.dot_dimension_numbers<[2], [2], [1], [1], [0, 0, 0, 1, 1, 1], [0], [0]>} : vector<8x8x16xf32>, vector<8x8x16xf32>, vector<8x8x8xf32> -> vector<8x8x8xf32>
    "tpu.trace_stop"() : () -> ()
    %14 = arith.truncf %13 : vector<8x8x8xf32> to vector<8x8x8xbf16>
    %c0_10 = arith.constant 0 : index
    %c0_11 = arith.constant 0 : index
    %c0_12 = arith.constant 0 : index
    %c0_13 = arith.constant 0 : index
    %15 = vector.load %arg5[%c0_10, %c0_11, %c0_12, %c0_13] : memref<1x8x8x8xbf16, #tpu.memory_space<vmem>>, vector<1x8x8x8xbf16>
    %16 = vector.shape_cast %15 : vector<1x8x8x8xbf16> to vector<8x8x8xbf16>
    %17 = vector.shape_cast %14 : vector<8x8x8xbf16> to vector<1x8x8x8xbf16>
    tpu.vector_store %arg5[%c0_10, %c0_11, %c0_12, %c0_13], %17 {strides = array<i32>} : memref<1x8x8x8xbf16, #tpu.memory_space<vmem>>, vector<1x8x8x8xbf16>,
    return
  }
  func.func @transform_0(%arg0: i32, %arg1: memref<256xi32, #tpu.memory_space<smem>>) -> (i32, i32, i32) {
    %c0_i32 = arith.constant 0 : i32
    %c0_i32_0 = arith.constant 0 : i32
    %c0_i32_1 = arith.constant 0 : i32
    return %arg0, %c0_i32, %c0_i32_0 : i32, i32, i32
  }
  func.func @transform_1(%arg0: i32, %arg1: memref<256xi32, #tpu.memory_space<smem>>) -> (i32, i32, i32) {
    %c0_i32 = arith.constant 0 : i32
    %c0_i32_0 = arith.constant 0 : i32
    %c0_i32_1 = arith.constant 0 : i32
    return %arg0, %c0_i32, %c0_i32_0 : i32, i32, i32
  }
  func.func @transform_2(%arg0: i32, %arg1: memref<256xi32, #tpu.memory_space<smem>>) -> (i32, i32, i32, i32) {
    %0 = arith.index_cast %arg0 : i32 to index
    %1 = memref.load %arg1[%0] : memref<256xi32, #tpu.memory_space<smem>>
    %c0_i32 = arith.constant 0 : i32
    %c0_i32_0 = arith.constant 0 : i32
    %c0_i32_1 = arith.constant 0 : i32
    %c0_i32_2 = arith.constant 0 : i32
    return %1, %c0_i32, %c0_i32_0, %c0_i32_1 : i32, i32, i32, i32
  }
  func.func @transform_3(%arg0: i32, %arg1: memref<256xi32, #tpu.memory_space<smem>>) -> (i32, i32, i32, i32) {
    %c0_i32 = arith.constant 0 : i32
    %c0_i32_0 = arith.constant 0 : i32
    %c0_i32_1 = arith.constant 0 : i32
    %c0_i32_2 = arith.constant 0 : i32
    return %arg0, %c0_i32, %c0_i32_0, %c0_i32_1 : i32, i32, i32, i32
  }
}

</mosaic_0001>

<bundles_post_ra>
// kernel: tpu_custom_call.1
= control target key start
LH: loop header
LB: loop body
LE: loop exit
PB: predicated region body
PF: predicated region fallthrough
CT: control target
= control target key end

     0   :  { %s1809_s15 = smov [#allocation3]   ;;  %s2078_s0 = inlined_call_operand.hbm [shape: s32[256], index: 0, kind: input, shape index: {}]   ;;  %s2079_s1 = inlined_call_operand.vmem [shape: f32[256,8,16], index: 1, kind: input, shape index: {}]   ;;  %s2080_s2 = inlined_call_operand.vmem [shape: f32[256,8,16], index: 2, kind: input, shape index: {}]   ;;  %s2081_s3 = inlined_call_operand.hbm [shape: f32[2,8,16,16], index: 3, kind: input, shape index: {}]   ;;  %s2082_s4 = inlined_call_operand.vmem [shape: bf16[256,8,8,8], index: 4, kind: output, shape index: {}]  }
   0x1   :  { %10 = dma.hbm_to_smem %s2078_s0, 32, %s1809_s15, [#allocation2] }
   0x2   :  { %1787 = dma.done.wait [#allocation2], 32 }
   0x3   :  { %1788 = vsyncadd [#allocation2], 4294967264 }
   0x4   :  { %12 = sfence }
   0x5   :  { %13 = vsyncpa [#allocation5], 0 }
   0x6   :  { %15 = vsyncpa [#allocation5 + $0x1], 0  ;;  %s1843_s18 = smov 0   ;;  %s1845_s19 = smov 0  }
   0x7   :  { %s1847_s20 = smov 0   ;;  %s1849_s21 = smov 0  }
   0x8 LB: > { %s1859_s0 = sadd.s32 1, %s1807_s21   ;;  %s1861_s22 = sadd.s32 4294967295, %s1807_s21   ;;  %s1807_s21 = sphi %s1849_s21, %s2093_s21   ;;  %s1803_s20 = sphi %s1847_s20, %s2092_s20   ;;  %s1799_s19 = sphi %s1845_s19, %s2091_s19   ;;  %s1795_s18 = sphi %s1843_s18, %s2090_s18  }
   0x9   : > { %s77_s23 = sld [smem:[#allocation3 + %s1807_s21]]  ;;  %p89_p0 = scmp.ne.s32.totalorder %s1803_s20, %s1799_s19 }
   0xa   : > { %s78_s24 = sld [smem:[#allocation3 + %s1859_s0]]  ;;  %p90_p1 = scmp.eq.s32.totalorder %s1807_s21, 0 }
   0xb   : > { %p95_p2 = scmp.ne.s32.totalorder %s1799_s19, %s1795_s18  ;;  %p96_p3 = scmp.eq.s32.totalorder %s1861_s22, 0 }
   0xc   : > { %p1868_p4 = por %p90_p1, %p89_p0  ;;  %s159_s27 = sand.u32 1, %s1803_s20  }
   0xd   : > { %p1872_p5 = por %p96_p3, %p95_p2  ;;  %s82_s28 = sadd.s32 1, %s1803_s20 }
   0xe   : > { %s1514_s29 = sshll.u32 %s159_s27, 7  ;;  %p1697_p6 = scmp.lt.s32.totalorder %s1807_s21, 256 }
   0xf   : > { %s2085_s26 = scalar_select %p1872_p5, 1, 0 }
  0x10   : > { %s79_s30 = ssub.s32 %s77_s23, %s78_s24  ;;  %p1887_p8 = pnand %p1697_p6, %p1868_p4 }
  0x11   : > { %p80_p7 = scmp.eq.s32.totalorder %s79_s30, 0  ;;  %s163_s10 = scalar_lea.vmem [#allocation4], %s1514_s29 }
  0x12   : > { %s1687_s5 = scalar_select %p1868_p4, [#allocation3], [#allocation6] }
  0x13   : > { %s1881_s6 = scalar_select %p80_p7, %s1803_s20, %s82_s28  }
  0x14   : > { %s1688_s7 = scalar_select %p1868_p4, %s1807_s21, 0 }
  0x15   : > { %s2095_s5 = smov (!%p1697_p6, %s1687_s5), [#allocation7]  ;;  %s171_s11 = sshll.u32 %s163_s10, 4  ;;  %s1891_s11 = int_to_ptr.vmem [resolvable:$true] %s171_s11 }
  0x16   : > { %s2097_s7 = smov (!%p1697_p6, %s1688_s7), 0  ;;  %p1517_p9 = scmp.ge.s32.totalorder %s1807_s21, 1 }
  0x17   : > { %s164_s9 = sld [smem:[%s2095_s5 + %s2097_s7]]  ;;  %p179_p10 = scmp.lt.s32.totalorder %s1807_s21, 257 }
  0x18   : > { %s1902_s17 = scalar_lea.sflag [#allocation5], %s159_s27  ;;  %p1745_p13 = pneg %p1887_p8 }
  0x19   : > { %p1893_p11 = pnand %p1517_p9, %p179_p10  ;;  %s1748_s24 = scalar_lea.hbm %s2081_s3, 4096 }
  0x1b   : > { %s2087_s12 = scalar_select %p1893_p11, 1, 0 }
  0x1d   : > { %s1549_s13 = sshll.u32 %s164_s9, 11 }
  0x1e   : > { %s1900_s16 = scalar_lea.hbm %s2081_s3, %s1549_s13 }
  0x1f   : > { %s1743_s18 = scalar_lea.hbm %s1900_s16, 2048  ;;  %p1749_p2 = scmp.lt.s32.totalorder %s1900_s16, %s2081_s3 }
  0x20   : > { %p1744_p12 = scmp.ne.s32.totalorder %s1900_s16, %s1743_s18  ;;  %p1750_p3 = scmp.lt.s32.totalorder %s1748_s24, %s1743_s18 }
  0x22   : > { %p1746_p0 = pnand %p1745_p13, %p1744_p12  ;;  %p1751_p4 = por %p1750_p3, %p1749_p2 }
  0x24   : > { %p1747_p1 = pneg %p1746_p0 }
  0x26   : > { %p1752_p6 = pnand %p1751_p4, %p1747_p1 }
  0x28   : > { %1755 = shalt.err (!%p1752_p6)
}
  0x29   : > { %s1756_s27 = scalar_lea.vmem %s1891_s11, 2048  ;;  %s1810_s29 = smov [#allocation4]  }
  0x2a   : > { %p1757_p7 = scmp.ne.s32.totalorder %s1891_s11, %s1756_s27  ;;  %s1761_s30 = sshll.u32 %s1810_s29, 4  ;;  %s1762_s30 = int_to_ptr.vmem [resolvable:$false] %s1761_s30 }
  0x2b   : > { %s1763_s5 = scalar_lea.vmem %s1762_s30, 4096  ;;  %p1764_p12 = scmp.lt.s32.totalorder %s1891_s11, %s1762_s30 }
  0x2c   : > { %p1759_p9 = pnand %p1757_p7, %p1745_p13  ;;  %p1765_p0 = scmp.lt.s32.totalorder %s1763_s5, %s1756_s27 }
  0x2e   : > { %p1760_p10 = pneg %p1759_p9  ;;  %p1766_p5 = por %p1765_p0, %p1764_p12 }
  0x30   : > { %p1767_p11 = pnand %p1766_p5, %p1760_p10 }
  0x32   : > { %1770 = shalt.err (!%p1767_p11)
}
  0x33   : > { %s1811_s7 = smov 128   ;;  %s1812_s9 = smov 8  }
  0x34   : > { %1696 = dma.hbm_to_vmem [thread:$0]  (!%p1887_p8), %s1900_s16, 2048, %s1891_s11, %s1902_s17, %s1811_s7, %s1811_s7, %s1812_s9  }
  0x35   : > { %p2088_p13 = scmp.ne.s32.totalorder %s2087_s12, 0 }
  0x36   : > { %s185_s10 = sand.u32 (!%p2088_p13), 1, %s1799_s19   ;;  %p2089_p5 = scmp.ne.s32.totalorder (!%p2088_p13), %s2085_s26, 0 }
  0x37   : > { %183 = sbr.rel (%p2088_p13) target bundleno = 474 (0x1da), region = 32  ;;  %s1518_s13 = sshll.u32 (!%p2088_p13), %s185_s10, 7 }
  0x38   : > { %s186_s14 = scalar_lea.sflag (!%p2088_p13), [#allocation5], %s185_s10  ;;  %s1926_s15 = scalar_lea.vmem (!%p2088_p13), [#allocation4], %s1518_s13 }
  0x3c   : > { %1790 = dma.done.wait (%p2089_p5), %s186_s14, 2048  }
  0x3d   : > { %1792 = vsyncadd (%p2089_p5), %s186_s14, 4294965248  ;;  %p220_p8 = scmp.lt.s32.totalorder %s1861_s22, 255  ;;  %v1813_v0 = vmov 0.0   ;;  %vm1814_vm0 = vmmov 0   ;;  %v237_v1 = vld [vmem:[%s1926_s15 + $0x8] sm:$0xff]  ;;  %v239_v2 = vld [vmem:[%s1926_s15 + $0x18] sm:$0xff] }
  0x3e   : > { %1591 = vmatprep.subr.mxu0 %v1813_v0  ;;  %1598 = vmatprep.subr.mxu1 %v1813_v0  ;;  %v236_v3 = vld [vmem:[%s1926_s15] sm:$0xff]  ;;  %v238_v4 = vld [vmem:[%s1926_s15 + $0x10] sm:$0xff]  ;;  %vm252_vm1 = vcmask 130048   ;;  %v241_v6 = vld [vmem:[%s1926_s15 + $0x28] sm:$0xff]  ;;  %vm1411_vm2 = vcmask 60416  }
  0x3f   : > { %1595 = vmatprep.mubr.msk.f32.mxu0 %vm1814_vm0, %v1813_v0  ;;  %1602 = vmatprep.mubr.msk.f32.mxu1 %vm1814_vm0, %v1813_v0  ;;  %s2099_s22 = smov (!%p220_p8, %s1861_s22), 255  ;;  %v243_v7 = vld [vmem:[%s1926_s15 + $0x38] sm:$0xff]  ;;  %v240_v8 = vld [vmem:[%s1926_s15 + $0x20] sm:$0xff]  ;;  %v242_v9 = vld [vmem:[%s1926_s15 + $0x30] sm:$0xff] }
  0x40   : > { %s1519_s26 = sshll.u32 %s2099_s22, 3  ;;  %1592 = vmatpush3.msra.mxu0 %v237_v1  ;;  %1599 = vmatpush3.msra.mxu1 %v239_v2  ;;  %v245_v10 = vld [vmem:[%s1926_s15 + $0x48] sm:$0xff]  ;;  %v247_v11 = vld [vmem:[%s1926_s15 + $0x58] sm:$0xff]  ;;  %v244_v12 = vld [vmem:[%s1926_s15 + $0x40] sm:$0xff]  ;;  %s1550_s21 = sshll.u32 %s2099_s22, 5 }
  0x41   : > { %s223_s12 = scalar_lea.vmem %s2079_s1, %s1519_s26  ;;  %1593 = vmatprep.subr.mxu0 %v1813_v0  ;;  %1600 = vmatprep.subr.mxu1 %v1813_v0  ;;  %v246_v13 = vld [vmem:[%s1926_s15 + $0x50] sm:$0xff]  ;;  %v249_v14 = vld [vmem:[%s1926_s15 + $0x68] sm:$0xff]  ;;  %v251_v15 = vld [vmem:[%s1926_s15 + $0x78] sm:$0xff]  ;;  %s227_s18 = scalar_lea.vmem %s2080_s2, %s1519_s26 }
  0x42   : > { %v234_v5 = vld [vmem:[%s223_s12] sm:$0xff]  ;;  %1594 = vmatpush3.msra.mxu0 %v236_v3  ;;  %1601 = vmatpush3.msra.mxu1 %v238_v4  ;;  %v250_v17 = vld [vmem:[%s1926_s15 + $0x70] sm:$0xff]  ;;  %s2047_s25 = scalar_lea.vmem %s2082_s4, %s1550_s21 }
  0x43   : > { %1596 = vmatmul.mubr.msk.f32.vlgmr.msra.gmra.mxu0 %vm252_vm1, %v234_v5  ;;  %1603 = vmatmul.mubr.msk.f32.vlgmr.msra.gmra.mxu1 %vm252_vm1, %v234_v5  ;;  %v248_v16 = vld [vmem:[%s1926_s15 + $0x60] sm:$0xff] }
  0x44   : > { %1605 = vmatprep.subr.mxu0 %v1813_v0  ;;  %1612 = vmatprep.subr.mxu1 %v1813_v0  ;;  %v235_v18 = vld [vmem:[%s227_s18] sm:$0xff] }
  0x45   : > { %1606 = vmatpush3.msra.mxu0 %v241_v6  ;;  %1613 = vmatpush3.msra.mxu1 %v243_v7 }
  0x46   : > { %1607 = vmatprep.subr.mxu0 %v1813_v0  ;;  %1614 = vmatprep.subr.mxu1 %v1813_v0 }
  0x47   : > { %1608 = vmatpush3.msra.mxu0 %v240_v8  ;;  %1609 = vmatprep.mubr.msk.f32.mxu0 %vm1814_vm0, %v1813_v0 }
  0x48   : > { %1615 = vmatpush3.msra.mxu1 %v242_v9  ;;  %1616 = vmatprep.mubr.msk.f32.mxu1 %vm1814_vm0, %v1813_v0 }
  0x49   : > { %1610 = vmatmul.mubr.msk.f32.vlgmr.msra.gmra.mxu0 %vm252_vm1, %v234_v5  ;;  %1617 = vmatmul.mubr.msk.f32.vlgmr.msra.gmra.mxu1 %vm252_vm1, %v234_v5 }
  0x4a   : > { %1619 = vmatprep.subr.mxu0 %v1813_v0  ;;  %1626 = vmatprep.subr.mxu1 %v1813_v0 }
  0x4b   : > { %1620 = vmatpush3.msra.mxu0 %v245_v10  ;;  %1627 = vmatpush3.msra.mxu1 %v247_v11 }
  0x4c   : > { %1621 = vmatprep.subr.mxu0 %v1813_v0  ;;  %1628 = vmatprep.subr.mxu1 %v1813_v0 }
  0x4d   : > { %1622 = vmatpush3.msra.mxu0 %v244_v12  ;;  %1623 = vmatprep.mubr.msk.f32.mxu0 %vm1814_vm0, %v1813_v0 }
  0x4e   : > { %1629 = vmatpush3.msra.mxu1 %v246_v13  ;;  %1630 = vmatprep.mubr.msk.f32.mxu1 %vm1814_vm0, %v1813_v0 }
  0x4f   : > { %1624 = vmatmul.mubr.msk.f32.vlgmr.msra.gmra.mxu0 %vm252_vm1, %v234_v5  ;;  %1631 = vmatmul.mubr.msk.f32.vlgmr.msra.gmra.mxu1 %vm252_vm1, %v234_v5 }
  0x50   : > { %1633 = vmatprep.subr.mxu0 %v1813_v0  ;;  %1640 = vmatprep.subr.mxu1 %v1813_v0 }
  0x51   : > { %1634 = vmatpush3.msra.mxu0 %v249_v14  ;;  %1641 = vmatpush3.msra.mxu1 %v251_v15 }
  0x52   : > { %1635 = vmatprep.subr.mxu0 %v1813_v0  ;;  %1642 = vmatprep.subr.mxu1 %v1813_v0 }
  0x53   : > { %1636 = vmatpush3.msra.mxu0 %v248_v16  ;;  %1637 = vmatprep.mubr.msk.f32.mxu0 %vm1814_vm0, %v1813_v0 }
  0x54   : > { %1643 = vmatpush3.msra.mxu1 %v250_v17  ;;  %1644 = vmatprep.mubr.msk.f32.mxu1 %vm1814_vm0, %v1813_v0 }
  0x55   : > { %1638 = vmatmul.mubr.msk.f32.vlgmr.msra.gmra.mxu0 %vm252_vm1, %v234_v5  ;;  %1645 = vmatmul.mubr.msk.f32.vlgmr.msra.gmra.mxu1 %vm252_vm1, %v234_v5 }
  0x56   : > { %1647 = vmatprep.subr.mxu0 %v1813_v0  ;;  %1652 = vmatprep.subr.mxu1 %v1813_v0 }
  0x57   : > { %1648 = vmatpush3.xpose.msk.msra.mxu0 %vm252_vm1, %v235_v18  ;;  %1653 = vmatpush3.xpose.msk.msra.mxu1 %vm252_vm1, %v235_v18 }
  0x58   : > { %1649 = vmatprep.mubr.msk.f32.mxu0 %vm1814_vm0, %v1813_v0  ;;  %1654 = vmatprep.mubr.msk.f32.mxu1 %vm1814_vm0, %v1813_v0 }
  0x59   : > { %1657 = vmatprep.subr.mxu0 %v1813_v0  ;;  %1662 = vmatprep.subr.mxu1 %v1813_v0 }
 0x103   : > { %v322_v19 = vpop.f32.mrf.mxu0  ;;  %v392_v20 = vpop.f32.mrf.mxu1 }
 0x104   : > { %1650 = vmatmul.mubr.msk.f32.vlgmr.msra.gmra.mxu0 %vm252_vm1, %v322_v19  ;;  %1655 = vmatmul.mubr.msk.f32.vlgmr.msra.gmra.mxu1 %vm252_vm1, %v392_v20 }
 0x105   : > { %v1597_v21 = vpop.f32.mrf.mxu0  ;;  %v1604_v22 = vpop.f32.mrf.mxu1  ;;  %1658 = vmatpush3.xpose.msk.msra.mxu0 %vm252_vm1, %v235_v18  ;;  %1663 = vmatpush3.xpose.msk.msra.mxu1 %vm252_vm1, %v235_v18 }
 0x106   : > { %1659 = vmatprep.mubr.msk.f32.mxu0 %vm1814_vm0, %v1813_v0  ;;  %1664 = vmatprep.mubr.msk.f32.mxu1 %vm1814_vm0, %v1813_v0 }
 0x107   : > { %1667 = vmatprep.subr.mxu0 %v1813_v0  ;;  %1672 = vmatprep.subr.mxu1 %v1813_v0 }
 0x109   : > { %v462_v23 = vpop.f32.mrf.mxu0  ;;  %v532_v24 = vpop.f32.mrf.mxu1 }
 0x10a   : > { %1660 = vmatmul.mubr.msk.f32.vlgmr.msra.gmra.mxu0 %vm252_vm1, %v462_v23  ;;  %1665 = vmatmul.mubr.msk.f32.vlgmr.msra.gmra.mxu1 %vm252_vm1, %v532_v24 }
 0x10b   : > { %v1611_v25 = vpop.f32.mrf.mxu0  ;;  %v1618_v26 = vpop.f32.mrf.mxu1  ;;  %1668 = vmatpush3.xpose.msk.msra.mxu0 %vm252_vm1, %v235_v18  ;;  %1673 = vmatpush3.xpose.msk.msra.mxu1 %vm252_vm1, %v235_v18 }
 0x10c   : > { %1669 = vmatprep.mubr.msk.f32.mxu0 %vm1814_vm0, %v1813_v0  ;;  %1674 = vmatprep.mubr.msk.f32.mxu1 %vm1814_vm0, %v1813_v0 }
 0x10d   : > { %1677 = vmatprep.subr.mxu0 %v1813_v0  ;;  %1682 = vmatprep.subr.mxu1 %v1813_v0 }
 0x10f   : > { %v602_v27 = vpop.f32.mrf.mxu0  ;;  %v672_v28 = vpop.f32.mrf.mxu1 }
 0x110   : > { %1670 = vmatmul.mubr.msk.f32.vlgmr.msra.gmra.mxu0 %vm252_vm1, %v602_v27  ;;  %1675 = vmatmul.mubr.msk.f32.vlgmr.msra.gmra.mxu1 %vm252_vm1, %v672_v28 }
 0x111   : > { %v1625_v29 = vpop.f32.mrf.mxu0  ;;  %v1632_v30 = vpop.f32.mrf.mxu1  ;;  %1678 = vmatpush3.xpose.msk.msra.mxu0 %vm252_vm1, %v235_v18  ;;  %1683 = vmatpush3.xpose.msk.msra.mxu1 %vm252_vm1, %v235_v18 }
 0x112   : > { %1679 = vmatprep.mubr.msk.f32.mxu0 %vm1814_vm0, %v1813_v0  ;;  %1684 = vmatprep.mubr.msk.f32.mxu1 %vm1814_vm0, %v1813_v0 }
 0x115   : > { %v742_v31 = vpop.f32.mrf.mxu0  ;;  %v812_v32 = vpop.f32.mrf.mxu1 }
 0x116   : > { %1680 = vmatmul.mubr.msk.f32.vlgmr.msra.gmra.mxu0 %vm252_vm1, %v742_v31  ;;  %1685 = vmatmul.mubr.msk.f32.vlgmr.msra.gmra.mxu1 %vm252_vm1, %v812_v32 }
 0x117   : > { %v1639_v33 = vpop.f32.mrf.mxu0  ;;  %v1646_v34 = vpop.f32.mrf.mxu1 }
 0x1c4   : > { %v888_v35 = vpop.f32.mrf.mxu0  ;;  %v961_v36 = vpop.f32.mrf.mxu1 }
 0x1c5   : > { %v1403_v37 = vpack.c.bf16 %v888_v35, %v888_v35  ;;  %v1404_v38 = vpack.c.bf16 %v961_v36, %v961_v36 }
 0x1c6   : > { %v1651_v39 = vpop.f32.mrf.mxu0  ;;  %v1656_v40 = vpop.f32.mrf.mxu1 }
 0x1c7   : > { %1412 = vst.msk [vmem:[%s2047_s25] sm:$0xf] %vm1411_vm2, %v1403_v37  ;;  %1413 = vst.msk [vmem:[%s2047_s25 + $0x4] sm:$0xf] %vm1411_vm2, %v1404_v38 }
 0x1ca   : > { %v1034_v41 = vpop.f32.mrf.mxu0  ;;  %v1107_v42 = vpop.f32.mrf.mxu1 }
 0x1cb   : > { %v1405_v43 = vpack.c.bf16 %v1034_v41, %v1034_v41  ;;  %v1406_v44 = vpack.c.bf16 %v1107_v42, %v1107_v42 }
 0x1cc   : > { %v1661_v45 = vpop.f32.mrf.mxu0  ;;  %v1666_v46 = vpop.f32.mrf.mxu1 }
 0x1cd   : > { %1414 = vst.msk [vmem:[%s2047_s25 + $0x8] sm:$0xf] %vm1411_vm2, %v1405_v43  ;;  %1415 = vst.msk [vmem:[%s2047_s25 + $0xc] sm:$0xf] %vm1411_vm2, %v1406_v44 }
 0x1d0   : > { %v1180_v47 = vpop.f32.mrf.mxu0  ;;  %v1253_v48 = vpop.f32.mrf.mxu1 }
 0x1d1   : > { %v1407_v49 = vpack.c.bf16 %v1180_v47, %v1180_v47  ;;  %v1408_v50 = vpack.c.bf16 %v1253_v48, %v1253_v48 }
 0x1d2   : > { %v1671_v51 = vpop.f32.mrf.mxu0  ;;  %v1676_v52 = vpop.f32.mrf.mxu1 }
 0x1d3   : > { %1416 = vst.msk [vmem:[%s2047_s25 + $0x10] sm:$0xf] %vm1411_vm2, %v1407_v49  ;;  %1417 = vst.msk [vmem:[%s2047_s25 + $0x14] sm:$0xf] %vm1411_vm2, %v1408_v50 }
 0x1d6   : > { %v1326_v53 = vpop.f32.mrf.mxu0  ;;  %v1399_v54 = vpop.f32.mrf.mxu1 }
 0x1d7   : > { %v1409_v55 = vpack.c.bf16 %v1326_v53, %v1326_v53  ;;  %v1410_v56 = vpack.c.bf16 %v1399_v54, %v1399_v54 }
 0x1d8   : > { %v1681_v57 = vpop.f32.mrf.mxu0  ;;  %v1686_v58 = vpop.f32.mrf.mxu1 }
 0x1d9   : > { %1418 = vst.msk [vmem:[%s2047_s25 + $0x18] sm:$0xf] %vm1411_vm2, %v1409_v55  ;;  %1419 = vst.msk [vmem:[%s2047_s25 + $0x1c] sm:$0xf] %vm1411_vm2, %v1410_v56 }
 0x1da PF: > { %p18_p11 = scmp.ge.s32.totalorder %s1859_s0, 258   ;;  %s2090_s18 = smov %s1799_s19 }
 0x1db   : > { %s2091_s19 = smov %s1803_s20  ;;  %s2092_s20 = smov %s1881_s6 }
 0x1dc   : > { %s2093_s21 = smov %s1859_s0  ;;  %20 = sbr.rel (!%p18_p11) target bundleno = 8 (0x8), region = 78 }
 0x1e1   :  { %1441 = vsyncpa [#allocation5], 1 }
 0x1e2   :  { %1443 = vsyncpa [#allocation5 + $0x1], 1 }

</bundles_post_ra>
